<compile_context>
chip_gen: v7x
topology: tpu7x:2x2x1
jax: 0.10.0
libtpu: 0.0.40
codegen_flags: <defaults>
</compile_context>

<pallas_src>
import functools

import jax
import jax.numpy as jnp
from jax import lax
from jax.experimental import pallas as pl
from jax.experimental.pallas import tpu as pltpu


def _discrete_kv_kernel(x_ref, w_ref, b_ref, ksq_ref, keysbd_ref, valsbd_ref,
                        o_ref, *, codebook_num, kv_pairs):
    """Fused DiscreteKV forward (all codebooks in one invocation).

    x_ref      : (B, Cin)         input
    w_ref      : (Cin, N*Ccb)     fused Linear weights (codebook blocks side-by-side)
    b_ref      : (1, N*Ccb)       fused Linear biases
    ksq_ref    : (1, N*K)         ||key||^2 per (codebook, key)
    keysbd_ref : (N*Ccb, N*K)     block-diagonal keys^T
    valsbd_ref : (N*K, N*Cout)    block-diagonal values
    o_ref      : (B, N*Cout)      lane-dense output, torch.concat order
    """
    x = x_ref[...]

    # Fused projection for every codebook: a single MXU pass.
    proj = jnp.dot(x, w_ref[...], preferred_element_type=jnp.float32) + b_ref[...]

    # Squared distance up to a per-row constant:
    #   ||p - k||^2 = ||p||^2 - 2 p.k + ||k||^2
    # ||p||^2 is constant over the argmin axis and sqrt is monotone, so both
    # are dropped.  Block-diagonal keys^T makes this one full-width MXU matmul.
    score = ksq_ref[...] - 2.0 * jnp.dot(
        proj, keysbd_ref[...], preferred_element_type=jnp.float32)   # (B, N*K)

    # Per-codebook argmin -> one-hot (first-occurrence tie-break, matching
    # torch.argmin).  Static unrolled loop over the (small) codebook count.
    onehots = []
    for c in range(codebook_num):
        s = score[:, c * kv_pairs:(c + 1) * kv_pairs]                # (B, K)
        min_s = jnp.min(s, axis=-1, keepdims=True)
        iota = lax.broadcasted_iota(jnp.int32, s.shape, 1)
        masked = jnp.where(s == min_s, iota, kv_pairs)
        argmin = jnp.min(masked, axis=-1, keepdims=True)
        onehots.append((iota == argmin).astype(jnp.float32))
    onehot = jnp.concatenate(onehots, axis=-1)                       # (B, N*K)

    # Gather values for all codebooks in one MXU pass; the block-diagonal
    # values matrix puts codebook c's output directly at columns
    # [c*Cout, (c+1)*Cout), i.e. torch.concat(ys, dim=-1) layout.
    o_ref[...] = jnp.dot(onehot, valsbd_ref[...],
                         preferred_element_type=jnp.float32).astype(o_ref.dtype)


def discrete_kv_forward(x, weights, biases, keys, values):
    """x: (B, Cin); weights: (N, Cin, Ccb); biases: (N, Ccb);
    keys: (N, K, Ccb); values: (N, K, Cout).  Returns (B, N*Cout)."""
    B, Cin = x.shape
    N, _, Ccb = weights.shape
    _, K, Cout = values.shape
    f32 = jnp.float32

    # Fused Linear parameters: column block c corresponds to codebook c.
    w_all = jnp.transpose(weights, (1, 0, 2)).reshape(Cin, N * Ccb).astype(f32)
    b_all = biases.reshape(1, N * Ccb).astype(f32)

    # ||key||^2 term, flattened per (codebook, key).
    ksq_all = jnp.sum(keys.astype(f32) ** 2, axis=-1).reshape(1, N * K)

    # Block-diagonal keys^T (N*Ccb, N*K) and values (N*K, N*Cout) so distance
    # and one-hot gather are each one full-width MXU matmul inside the kernel.
    # TODO(synk): for large codebook_num, switch to a grid over codebook groups
    # instead of block-diagonal operands (these grow as N^2).
    keysbd = jnp.zeros((N * Ccb, N * K), f32)
    valsbd = jnp.zeros((N * K, N * Cout), f32)
    for c in range(N):
        keysbd = keysbd.at[c * Ccb:(c + 1) * Ccb, c * K:(c + 1) * K].set(
            keys[c].astype(f32).T)
        valsbd = valsbd.at[c * K:(c + 1) * K, c * Cout:(c + 1) * Cout].set(
            values[c].astype(f32))

    kernel = functools.partial(_discrete_kv_kernel,
                               codebook_num=N, kv_pairs=K)

    # Single invocation, no grid: every operand is resident in VMEM (a few KiB
    # at these shapes — far under the scoped limit on all generations).
    return pl.pallas_call(
        kernel,
        out_shape=jax.ShapeDtypeStruct((B, N * Cout), jnp.float32),
        compiler_params=pltpu.CompilerParams(
            vmem_limit_bytes=32 * 1024 * 1024),
    )(x.astype(f32), w_all, b_all, ksq_all, keysbd, valsbd)


def discrete_kv_reference(x, weights, biases, keys, values):
    """Pure-JAX reference mirroring the PyTorch forward exactly."""
    ys = []
    N = weights.shape[0]
    for c in range(N):
        proj = x @ weights[c] + biases[c]                       # (B, Ccb)
        diff = proj[:, None, :] - keys[c][None, :, :]           # (B, K, Ccb)
        dist = jnp.sqrt(jnp.sum(diff ** 2, axis=-1))            # (B, K)
        idx = jnp.argmin(dist, axis=-1)                         # (B,)
        ys.append(values[c][idx])                               # (B, Cout)
    return jnp.concatenate(ys, axis=-1)


if __name__ == "__main__":
    # Small shapes consistent with the module.
    batch = 8
    input_channel = 32
    codebook_input_channel = 16
    output_channel = 8
    codebook_num = 4
    kv_pairs_num = 8

    key = jax.random.PRNGKey(0)
    k_x, k_w, k_b, k_keys, k_vals = jax.random.split(key, 5)

    x = jax.random.normal(k_x, (batch, input_channel), dtype=jnp.float32)

    # Deterministic parameter init (shapes from the module's __init__):
    # nn.Linear(input_channel, codebook_input_channel) weight/bias per codebook.
    weights = (jax.random.uniform(
        k_w, (codebook_num, input_channel, codebook_input_channel),
        dtype=jnp.float32, minval=-1.0, maxval=1.0)
        / jnp.sqrt(jnp.float32(input_channel)))
    biases = (jax.random.uniform(
        k_b, (codebook_num, codebook_input_channel),
        dtype=jnp.float32, minval=-1.0, maxval=1.0)
        / jnp.sqrt(jnp.float32(input_channel)))
    # CodeBook: keys = (rand - 0.5) * 3 ; values = randn.
    keys = (jax.random.uniform(
        k_keys, (codebook_num, kv_pairs_num, codebook_input_channel),
        dtype=jnp.float32) - 0.5) * 3.0
    values = jax.random.normal(
        k_vals, (codebook_num, kv_pairs_num, output_channel),
        dtype=jnp.float32)

    y = discrete_kv_forward(x, weights, biases, keys, values)
    y = jax.block_until_ready(y)

    y_ref = discrete_kv_reference(x, weights, biases, keys, values)
    assert y.shape == (batch, codebook_num * output_channel), y.shape
    # Note: the kernel uses the expanded squared-distance (no sqrt, no ||p||^2
    # term); argmin is identical except on exact FP ties, which don't occur
    # with this random data.
    assert jnp.allclose(y, y_ref, atol=1e-5, rtol=1e-5), (
        float(jnp.max(jnp.abs(y - y_ref))))

    print("KERNEL_OK")
</pallas_src>

<mosaic_0001>
module attributes {stable_mosaic.version = 11 : i64} {
  func.func @_discrete_kv_kernel(%arg0: memref<8x32xf32, #tpu.memory_space<vmem>>, %arg1: memref<32x64xf32, #tpu.memory_space<vmem>>, %arg2: memref<1x64xf32, #tpu.memory_space<vmem>>, %arg3: memref<1x32xf32, #tpu.memory_space<vmem>>, %arg4: memref<64x32xf32, #tpu.memory_space<vmem>>, %arg5: memref<32x32xf32, #tpu.memory_space<vmem>>, %arg6: memref<8x32xf32, #tpu.memory_space<vmem>>) attributes {dimension_semantics = [], scalar_prefetch = 0 : i64, scratch_operands = 0 : i64, tpu.core_type = #tpu.core_type<tc>} {
    %c0 = arith.constant 0 : index
    %c0_0 = arith.constant 0 : index
    %0 = vector.load %arg0[%c0, %c0_0] : memref<8x32xf32, #tpu.memory_space<vmem>>, vector<8x32xf32>
    %c0_1 = arith.constant 0 : index
    %c0_2 = arith.constant 0 : index
    %1 = vector.load %arg1[%c0_1, %c0_2] : memref<32x64xf32, #tpu.memory_space<vmem>>, vector<32x64xf32>
    %cst = arith.constant dense<0.000000e+00> : vector<8x64xf32>
    %2 = tpu.matmul %0, %1, %cst {dimension_numbers = #tpu.dot_dimension_numbers<[1], [0], [0], [1], [0, 0, 1, 1], [], []>} : vector<8x32xf32>, vector<32x64xf32>, vector<8x64xf32> -> vector<8x64xf32>
    %c0_3 = arith.constant 0 : index
    %c0_4 = arith.constant 0 : index
    %3 = vector.load %arg2[%c0_3, %c0_4] : memref<1x64xf32, #tpu.memory_space<vmem>>, vector<1x64xf32>
    %4 = vector.broadcast %3 : vector<1x64xf32> to vector<8x64xf32>
    %5 = arith.addf %2, %4 : vector<8x64xf32>
    %c0_5 = arith.constant 0 : index
    %c0_6 = arith.constant 0 : index
    %6 = vector.load %arg3[%c0_5, %c0_6] : memref<1x32xf32, #tpu.memory_space<vmem>>, vector<1x32xf32>
    %c0_7 = arith.constant 0 : index
    %c0_8 = arith.constant 0 : index
    %7 = vector.load %arg4[%c0_7, %c0_8] : memref<64x32xf32, #tpu.memory_space<vmem>>, vector<64x32xf32>
    %cst_9 = arith.constant dense<0.000000e+00> : vector<8x32xf32>
    %8 = tpu.matmul %5, %7, %cst_9 {dimension_numbers = #tpu.dot_dimension_numbers<[1], [0], [0], [1], [0, 0, 1, 1], [], []>} : vector<8x64xf32>, vector<64x32xf32>, vector<8x32xf32> -> vector<8x32xf32>
    %cst_10 = arith.constant 2.000000e+00 : f32
    %9 = vector.broadcast %cst_10 : f32 to vector<8x32xf32>
    %10 = arith.mulf %9, %8 : vector<8x32xf32>
    %11 = vector.broadcast %6 : vector<1x32xf32> to vector<8x32xf32>
    %12 = arith.subf %11, %10 : vector<8x32xf32>
    %13 = vector.extract_strided_slice %12 {offsets = [0, 0], sizes = [8, 8], strides = [1, 1]} : vector<8x32xf32> to vector<8x8xf32>
    %cst_11 = arith.constant dense<0x7F800000> : vector<8xf32>
    %14 = vector.multi_reduction <minimumf>, %13, %cst_11 [1] : vector<8x8xf32> to vector<8xf32>
    %15 = vector.shape_cast %14 : vector<8xf32> to vector<8x1xf32>
    %16 = tpu.iota {dimensions = array<i32: 1>} : vector<8x8xi32>
    %17 = vector.broadcast %15 : vector<8x1xf32> to vector<8x8xf32>
    %18 = arith.cmpf oeq, %13, %17 : vector<8x8xf32>
    %c8_i32 = arith.constant 8 : i32
    %19 = vector.broadcast %c8_i32 : i32 to vector<8x8xi32>
    %20 = arith.select %18, %16, %19 : vector<8x8xi1>, vector<8x8xi32>
    %cst_12 = arith.constant dense<2147483647> : vector<8xi32>
    %21 = vector.multi_reduction <minsi>, %20, %cst_12 [1] : vector<8x8xi32> to vector<8xi32>
    %22 = vector.shape_cast %21 : vector<8xi32> to vector<8x1xi32>
    %23 = vector.broadcast %22 : vector<8x1xi32> to vector<8x8xi32>
    %24 = arith.cmpi eq, %16, %23 : vector<8x8xi32>
    %25 = arith.extui %24 : vector<8x8xi1> to vector<8x8xi32>
    %26 = arith.sitofp %25 : vector<8x8xi32> to vector<8x8xf32>
    %27 = vector.extract_strided_slice %12 {offsets = [0, 8], sizes = [8, 8], strides = [1, 1]} : vector<8x32xf32> to vector<8x8xf32>
    %cst_13 = arith.constant dense<0x7F800000> : vector<8xf32>
    %28 = vector.multi_reduction <minimumf>, %27, %cst_13 [1] : vector<8x8xf32> to vector<8xf32>
    %29 = vector.shape_cast %28 : vector<8xf32> to vector<8x1xf32>
    %30 = tpu.iota {dimensions = array<i32: 1>} : vector<8x8xi32>
    %31 = vector.broadcast %29 : vector<8x1xf32> to vector<8x8xf32>
    %32 = arith.cmpf oeq, %27, %31 : vector<8x8xf32>
    %c8_i32_14 = arith.constant 8 : i32
    %33 = vector.broadcast %c8_i32_14 : i32 to vector<8x8xi32>
    %34 = arith.select %32, %30, %33 : vector<8x8xi1>, vector<8x8xi32>
    %cst_15 = arith.constant dense<2147483647> : vector<8xi32>
    %35 = vector.multi_reduction <minsi>, %34, %cst_15 [1] : vector<8x8xi32> to vector<8xi32>
    %36 = vector.shape_cast %35 : vector<8xi32> to vector<8x1xi32>
    %37 = vector.broadcast %36 : vector<8x1xi32> to vector<8x8xi32>
    %38 = arith.cmpi eq, %30, %37 : vector<8x8xi32>
    %39 = arith.extui %38 : vector<8x8xi1> to vector<8x8xi32>
    %40 = arith.sitofp %39 : vector<8x8xi32> to vector<8x8xf32>
    %41 = vector.extract_strided_slice %12 {offsets = [0, 16], sizes = [8, 8], strides = [1, 1]} : vector<8x32xf32> to vector<8x8xf32>
    %cst_16 = arith.constant dense<0x7F800000> : vector<8xf32>
    %42 = vector.multi_reduction <minimumf>, %41, %cst_16 [1] : vector<8x8xf32> to vector<8xf32>
    %43 = vector.shape_cast %42 : vector<8xf32> to vector<8x1xf32>
    %44 = tpu.iota {dimensions = array<i32: 1>} : vector<8x8xi32>
    %45 = vector.broadcast %43 : vector<8x1xf32> to vector<8x8xf32>
    %46 = arith.cmpf oeq, %41, %45 : vector<8x8xf32>
    %c8_i32_17 = arith.constant 8 : i32
    %47 = vector.broadcast %c8_i32_17 : i32 to vector<8x8xi32>
    %48 = arith.select %46, %44, %47 : vector<8x8xi1>, vector<8x8xi32>
    %cst_18 = arith.constant dense<2147483647> : vector<8xi32>
    %49 = vector.multi_reduction <minsi>, %48, %cst_18 [1] : vector<8x8xi32> to vector<8xi32>
    %50 = vector.shape_cast %49 : vector<8xi32> to vector<8x1xi32>
    %51 = vector.broadcast %50 : vector<8x1xi32> to vector<8x8xi32>
    %52 = arith.cmpi eq, %44, %51 : vector<8x8xi32>
    %53 = arith.extui %52 : vector<8x8xi1> to vector<8x8xi32>
    %54 = arith.sitofp %53 : vector<8x8xi32> to vector<8x8xf32>
    %55 = vector.extract_strided_slice %12 {offsets = [0, 24], sizes = [8, 8], strides = [1, 1]} : vector<8x32xf32> to vector<8x8xf32>
    %cst_19 = arith.constant dense<0x7F800000> : vector<8xf32>
    %56 = vector.multi_reduction <minimumf>, %55, %cst_19 [1] : vector<8x8xf32> to vector<8xf32>
    %57 = vector.shape_cast %56 : vector<8xf32> to vector<8x1xf32>
    %58 = tpu.iota {dimensions = array<i32: 1>} : vector<8x8xi32>
    %59 = vector.broadcast %57 : vector<8x1xf32> to vector<8x8xf32>
    %60 = arith.cmpf oeq, %55, %59 : vector<8x8xf32>
    %c8_i32_20 = arith.constant 8 : i32
    %61 = vector.broadcast %c8_i32_20 : i32 to vector<8x8xi32>
    %62 = arith.select %60, %58, %61 : vector<8x8xi1>, vector<8x8xi32>
    %cst_21 = arith.constant dense<2147483647> : vector<8xi32>
    %63 = vector.multi_reduction <minsi>, %62, %cst_21 [1] : vector<8x8xi32> to vector<8xi32>
    %64 = vector.shape_cast %63 : vector<8xi32> to vector<8x1xi32>
    %65 = vector.broadcast %64 : vector<8x1xi32> to vector<8x8xi32>
    %66 = arith.cmpi eq, %58, %65 : vector<8x8xi32>
    %67 = arith.extui %66 : vector<8x8xi1> to vector<8x8xi32>
    %68 = arith.sitofp %67 : vector<8x8xi32> to vector<8x8xf32>
    %69 = tpu.concatenate %26, %40, %54, %68 in 1 : vector<8x8xf32>, vector<8x8xf32>, vector<8x8xf32>, vector<8x8xf32> -> vector<8x32xf32>
    %c0_22 = arith.constant 0 : index
    %c0_23 = arith.constant 0 : index
    %70 = vector.load %arg5[%c0_22, %c0_23] : memref<32x32xf32, #tpu.memory_space<vmem>>, vector<32x32xf32>
    %cst_24 = arith.constant dense<0.000000e+00> : vector<8x32xf32>
    %71 = tpu.matmul %69, %70, %cst_24 {dimension_numbers = #tpu.dot_dimension_numbers<[1], [0], [0], [1], [0, 0, 1, 1], [], []>} : vector<8x32xf32>, vector<32x32xf32>, vector<8x32xf32> -> vector<8x32xf32>
    %c0_25 = arith.constant 0 : index
    %c0_26 = arith.constant 0 : index
    %72 = vector.load %arg6[%c0_25, %c0_26] : memref<8x32xf32, #tpu.memory_space<vmem>>, vector<8x32xf32>
    tpu.vector_store %arg6[%c0_25, %c0_26], %71 {strides = array<i32>} : memref<8x32xf32, #tpu.memory_space<vmem>>, vector<8x32xf32>,
    return
  }
}

</mosaic_0001>

<bundles_post_ra>
// kernel: tpu_custom_call.1
= control target key start
LH: loop header
LB: loop body
LE: loop exit
PB: predicated region body
PF: predicated region fallthrough
CT: control target
= control target key end

     0   :  { %v538_v3 = vmov 0.0|0.0   ;;  %vm539_vm0 = vmmov 0   ;;  %v540_v6 = vmov 0.0   ;;  %s695_s0 = inlined_call_operand.vmem [shape: f32[8,32], index: 0, kind: input, shape index: {}]   ;;  %s696_s1 = inlined_call_operand.vmem [shape: f32[32,64], index: 1, kind: input, shape index: {}]   ;;  %s697_s2 = inlined_call_operand.vmem [shape: f32[1,64], index: 2, kind: input, shape index: {}]   ;;  %s698_s3 = inlined_call_operand.vmem [shape: f32[1,32], index: 3, kind: input, shape index: {}]   ;;  %s699_s4 = inlined_call_operand.vmem [shape: f32[64,32], index: 4, kind: input, shape index: {}]   ;;  %s700_s5 = inlined_call_operand.vmem [shape: f32[32,32], index: 5, kind: input, shape index: {}]   ;;  %s701_s6 = inlined_call_operand.hbm [shape: f32[8,32], index: 6, kind: output, shape index: {}]  }
   0x1   :  { %v25_v0 = vld [vmem:[%s696_s1] sm:$0xff]  ;;  %v26_v1 = vld [vmem:[%s696_s1 + $0x8] sm:$0xff]  ;;  %v27_v2 = vld [vmem:[%s696_s1 + $0x10] sm:$0xff]  ;;  %483 = vmatprep.subr.bf16.mxu0 %v538_v3  ;;  %450 = vmatprep.mubr.msk.f32.mxu0 %vm539_vm0, %v540_v6 }
   0x2   :  { %v484_v4 = vpack.c.bf16 %v26_v1, %v25_v0  ;;  %v28_v5 = vld [vmem:[%s696_s1 + $0x18] sm:$0xff]  ;;  %v111_v7 = vld [vmem:[%s699_s4] sm:$0xff]  ;;  %489 = vmatprep.subr.bf16.mxu1 %v538_v3  ;;  %v112_v8 = vld [vmem:[%s699_s4 + $0x8] sm:$0xff]  ;;  %469 = vmatprep.mubr.msk.f32.mxu1 %vm539_vm0, %v540_v6 }
   0x3   :  { %v113_v9 = vld [vmem:[%s699_s4 + $0x10] sm:$0xff]  ;;  %v114_v10 = vld [vmem:[%s699_s4 + $0x18] sm:$0xff]  ;;  %v487_v11 = vpack.c.bf16 %v28_v5, %v27_v2  ;;  %v490_v12 = vpack.c.bf16 %v112_v8, %v111_v7 }
   0x4   :  { %485 = vmatpush3.bf16.msra.mxu0 %v484_v4 }
   0x5   :  { %486 = vmatprep.subr.bf16.mxu0 %v538_v3 }
   0x6   :  { %11 = vsyncpa [#allocation3], 0  ;;  %491 = vmatpush3.bf16.msra.mxu1 %v490_v12  ;;  %v493_v13 = vpack.c.bf16 %v114_v10, %v113_v9  ;;  %v115_v14 = vld [vmem:[%s699_s4 + $0x20] sm:$0xff]  ;;  %v116_v15 = vld [vmem:[%s699_s4 + $0x28] sm:$0xff]  ;;  %vm36_vm1 = vcmask 261120   ;;  %v205_v21 = vlaneseq  ;;  %s541_s21 = smov 8  }
   0x7   :  { %492 = vmatprep.subr.bf16.mxu1 %v538_v3  ;;  %v24_v16 = vld [vmem:[%s695_s0] sm:$0xff]  ;;  %v496_v17 = vpack.c.bf16 %v116_v15, %v115_v14  ;;  %v117_v18 = vld [vmem:[%s699_s4 + $0x30] sm:$0xff]  ;;  %v118_v19 = vld [vmem:[%s699_s4 + $0x38] sm:$0xff]  ;;  %vm119_vm2 = vcmask 523264   ;;  %vm279_vm3 = vcmask 261312   ;;  %vm227_vm4 = vcmask 130112  }
   0x8   :  { %488 = vmatpush3.bf16.msra.mxu0 %v487_v11  ;;  %v499_v20 = vpack.c.bf16 %v118_v19, %v117_v18  ;;  %v633_v22 = vand.u32 127, %v205_v21  ;;  %v414_v23 = vld [vmem:[%s697_s2] ss:$0 sm:$0xff]  ;;  %vm253_vm5 = vcmask 195712   ;;  %s542_s2 = smov 24   ;;  %vm201_vm6 = vcmask 64512  }
   0x9   :  { %501 = vmatprep.subr.bf16.mxu0 %v538_v3  ;;  %v417_v27 = vld [vmem:[%s698_s3] ss:$0 sm:$0xff]  ;;  %s543_s3 = smov 16   ;;  %v323_v14 = vld [vmem:[%s700_s5 + $0x8] sm:$0xff]  ;;  %v325_v18 = vld [vmem:[%s700_s5 + $0x18] sm:$0xff] }
   0xa   :  { %494 = vmatpush3.bf16.msra.mxu1 %v493_v13  ;;  %232 = vrot.lane.b32.xlu1 %v633_v22, %s541_s21  ;;  %v322_v13 = vld [vmem:[%s700_s5] sm:$0xff] }
   0xb   :  { %451 = vmatmul.mubr.msk.f32.vlgmr.msra.gmra.mrb[0].mxu0 %vm36_vm1, %v24_v16  ;;  %495 = vmatprep.subr.bf16.mxu1 %v538_v3  ;;  %v502_v15 = vpack.c.bf16 %v323_v14, %v322_v13 }
   0xc   :  { %480 = vmatprep.mubr.msk.f32.mxu0 %vm539_vm0, %v540_v6 }
   0xd   :  { %503 = vmatpush3.bf16.msra.mxu0 %v502_v15 }
   0xe   :  { %497 = vmatpush3.bf16.msra.mxu1 %v496_v17  ;;  %504 = vmatprep.subr.bf16.mxu0 %v538_v3  ;;  %v324_v17 = vld [vmem:[%s700_s5 + $0x10] sm:$0xff]  ;;  %s544_s5 = smov [#allocation2]  }
   0xf   :  { %498 = vmatprep.subr.bf16.mxu1 %v538_v3  ;;  %v505_v19 = vpack.c.bf16 %v325_v18, %v324_v17  ;;  %s406_s9 = sshll.u32 %s544_s5, 4  ;;  %s407_s9 = int_to_ptr.vmem [resolvable:$true] %s406_s9 }
  0x10   :  { %s514_s10 = scalar_lea.vmem %s407_s9, 128  ;;  %p519_p1 = scmp.lt.s32.totalorder %s407_s9, %s407_s9 }
  0x11   :  { %506 = vmatpush3.bf16.msra.mxu0 %v505_v19  ;;  %p515_p0 = scmp.ne.s32.totalorder %s407_s9, %s514_s10  ;;  %p520_p2 = scmp.lt.s32.totalorder %s514_s10, %s514_s10 }
  0x12   :  { %500 = vmatpush3.bf16.msra.mxu1 %v499_v20 }
  0x13   :  { %p521_p3 = por %p520_p2, %p519_p1 }
  0x15   :  { %p522_p4 = pnand %p521_p3, %p515_p0 }
  0x7c   :  { %v233_v36 = vpop.permute.xlu1 %232 }
  0xde   :  { %v106_v24 = vpop.f32.mrb[0].mxu0 }
  0xdf   :  { %v107_v25 = vadd.f32 %v414_v23, %v106_v24  ;;  %v452_v26 = vpop.f32.mrb[1].mxu0 }
  0xe1   :  { %470 = vmatmul.mubr.msk.f32.vlgmr.msra.gmra.mrb[0].mxu1 %vm119_vm2, %v107_v25 }
 0x1b4   :  { %v189_v28 = vpop.f32.mrb[0].mxu1 }
 0x1b5   :  { %v193_v29 = vmul.f32 2.0, %v189_v28  ;;  %v471_v30 = vpop.f32.mrb[1].mxu1 }
 0x1b7   :  { %v200_v31 = vsub.f32 %v417_v27, %v193_v29 }
 0x1b9   :  { %v280_v32 = vsel %vm279_vm3, %v200_v31, inf  ;;  %v228_v33 = vsel %vm227_vm4, %v200_v31, inf  ;;  %v254_v34 = vsel %vm253_vm5, %v200_v31, inf  ;;  %v202_v35 = vsel %vm201_vm6, %v200_v31, inf }
 0x1ba   :  { %281 = vmin.xlane.f32.xlu1 %v280_v32  ;;  %229 = vmin.xlane.f32.xlu0 %v228_v33 }
 0x1be   :  { %255 = vmin.xlane.f32.xlu0 %v254_v34 }
 0x1cb   :  { %284 = vrot.lane.b32.xlu1 %v633_v22, %s542_s2 }
 0x1d4   :  { %258 = vrot.lane.b32.xlu0 %v633_v22, %s543_s3 }
 0x1ef   :  { %203 = vmin.xlane.f32.xlu1 %v202_v35 }
 0x247   :  { %v282_v37 = vpop.xlane.xlu1 %281  ;;  %v230_v38 = vpop.xlane.xlu0 %229 }
 0x248   :  { %vm231_vm7 = vcmp.eq.f32.partialorder %v200_v31, %v230_v38  ;;  %vm283_vm8 = vcmp.eq.f32.partialorder %v200_v31, %v282_v37 }
 0x249   :  { %v234_v39 = vsel %vm231_vm7, %v233_v36, 8 }
 0x24a   :  { %v235_v40 = vsel %vm227_vm4, %v234_v39, 2147483647  ;;  %vm318_vm4 = vcmask 130048  }
 0x24b   :  { %v285_v41 = vpop.permute.xlu1 %284  ;;  %v256_v42 = vpop.xlane.xlu0 %255  ;;  %v237_v43 = vshra.s32 %v235_v40, 16  ;;  %v236_v59 = vand.u32 65535, %v235_v40 }
 0x24c   :  { %v286_v44 = vsel %vm283_vm8, %v285_v41, 8  ;;  %vm257_vm9 = vcmp.eq.f32.partialorder %v200_v31, %v256_v42 }
 0x24d   :  { %v287_v45 = vsel %vm279_vm3, %v286_v44, 2147483647  ;;  %v239_v46 = vcvt.s32.f32 %v237_v43  ;;  %v238_v62 = vcvt.s32.f32 %v236_v59 }
 0x24e   :  { %v289_v47 = vshra.s32 %v287_v45, 16  ;;  %v288_v60 = vand.u32 65535, %v287_v45 }
 0x24f   :  { %240 = vmin.xlane.f32.xlu0 %v239_v46  ;;  %v259_v48 = vpop.permute.xlu0 %258 }
 0x250   :  { %v260_v49 = vsel %vm257_vm9, %v259_v48, 8  ;;  %v291_v50 = vcvt.s32.f32 %v289_v47  ;;  %v290_v2 = vcvt.s32.f32 %v288_v60 }
 0x251   :  { %v261_v51 = vsel %vm253_vm5, %v260_v49, 2147483647  ;;  %vm320_vm5 = vcmask 195584  }
 0x252   :  { %292 = vmin.xlane.f32.xlu1 %v291_v50  ;;  %v263_v52 = vshra.s32 %v261_v51, 16  ;;  %v262_v0 = vand.u32 65535, %v261_v51 }
 0x254   :  { %v265_v53 = vcvt.s32.f32 %v263_v52  ;;  %v264_v7 = vcvt.s32.f32 %v262_v0 }
 0x256   :  { %266 = vmin.xlane.f32.xlu0 %v265_v53 }
 0x27c   :  { %v204_v54 = vpop.xlane.xlu1 %203 }
 0x27d   :  { %vm207_vm10 = vcmp.eq.f32.partialorder %v200_v31, %v204_v54 }
 0x27e   :  { %v208_v55 = vsel %vm207_vm10, %v633_v22, 8 }
 0x27f   :  { %v209_v56 = vsel %vm201_vm6, %v208_v55, 2147483647 }
 0x280   :  { %v211_v57 = vshra.s32 %v209_v56, 16  ;;  %v210_v9 = vand.u32 65535, %v209_v56 }
 0x282   :  { %v213_v58 = vcvt.s32.f32 %v211_v57  ;;  %v212_v11 = vcvt.s32.f32 %v210_v9 }
 0x284   :  { %214 = vmin.xlane.f32.xlu0 %v213_v58 }
 0x2dc   :  { %v241_v61 = vpop.xlane.xlu0 %240 }
 0x2dd   :  { %vm242_vm11 = vcmp.eq.f32.partialorder %v239_v46, %v241_v61  ;;  %v247_v16 = vcvt.f32.s32 %v241_v61 }
 0x2de   :  { %v243_v63 = vsel %vm242_vm11, %v238_v62, inf }
 0x2df   :  { %244 = vmin.xlane.f32.xlu1 %v243_v63  ;;  %v293_v1 = vpop.xlane.xlu1 %292  ;;  %v248_v21 = vshll.u32 %v247_v16, 16 }
 0x2e0   :  { %vm294_vm12 = vcmp.eq.f32.partialorder %v291_v50, %v293_v1  ;;  %v299_v23 = vcvt.f32.s32 %v293_v1 }
 0x2e1   :  { %v295_v4 = vsel %vm294_vm12, %v290_v2, inf }
 0x2e2   :  { %v300_v28 = vshll.u32 %v299_v23, 16 }
 0x2e3   :  { %v267_v5 = vpop.xlane.xlu0 %266  ;;  %296 = vmin.xlane.f32.xlu1 %v295_v4 }
 0x2e4   :  { %vm268_vm13 = vcmp.eq.f32.partialorder %v265_v53, %v267_v5  ;;  %v273_v26 = vcvt.f32.s32 %v267_v5 }
 0x2e5   :  { %v269_v8 = vsel %vm268_vm13, %v264_v7, inf }
 0x2e6   :  { %270 = vmin.xlane.f32.xlu0 %v269_v8  ;;  %v274_v32 = vshll.u32 %v273_v26, 16 }
 0x311   :  { %v215_v10 = vpop.xlane.xlu0 %214 }
 0x312   :  { %vm216_vm14 = vcmp.eq.f32.partialorder %v213_v58, %v215_v10  ;;  %v221_v38 = vcvt.f32.s32 %v215_v10 }
 0x313   :  { %v217_v12 = vsel %vm216_vm14, %v212_v11, inf }
 0x314   :  { %218 = vmin.xlane.f32.xlu0 %v217_v12  ;;  %v222_v40 = vshll.u32 %v221_v38, 16 }
 0x36c   :  { %v245_v20 = vpop.xlane.xlu1 %244 }
 0x36d   :  { %v246_v24 = vcvt.f32.s32 %v245_v20 }
 0x36f   :  { %v249_v25 = vadd.s32 %v248_v21, %v246_v24 }
 0x370   :  { %v297_v27 = vpop.xlane.xlu1 %296 }
 0x371   :  { %v298_v29 = vcvt.f32.s32 %v297_v27  ;;  %vm250_vm15 = vcmp.eq.s32.totalorder %v633_v22, %v249_v25 }
 0x372   :  { %v419_v3 = vsel %vm250_vm15, 1.0, %v540_v6 }
 0x373   :  { %v301_v30 = vadd.s32 %v300_v28, %v298_v29  ;;  %v271_v31 = vpop.xlane.xlu0 %270  ;;  %306 = vrot.lane.b32.xlu1 %v419_v3, %s541_s21 }
 0x374   :  { %v272_v33 = vcvt.f32.s32 %v271_v31 }
 0x375   :  { %vm302_vm0 = vcmp.eq.s32.totalorder %v633_v22, %v301_v30 }
 0x376   :  { %v275_v34 = vadd.s32 %v274_v32, %v272_v33  ;;  %v421_v35 = vsel %vm302_vm0, 1.0, %v540_v6 }
 0x377   :  { %314 = vrot.lane.b32.xlu1 %v421_v35, %s542_s2 }
 0x378   :  { %vm276_vm2 = vcmp.eq.s32.totalorder %v633_v22, %v275_v34 }
 0x379   :  { %v420_v36 = vsel %vm276_vm2, 1.0, %v540_v6 }
 0x37a   :  { %310 = vrot.lane.b32.xlu0 %v420_v36, %s543_s3 }
 0x3a1   :  { %v219_v37 = vpop.xlane.xlu0 %218 }
 0x3a2   :  { %v220_v39 = vcvt.f32.s32 %v219_v37 }
 0x3a4   :  { %v223_v41 = vadd.s32 %v222_v40, %v220_v39 }
 0x3a6   :  { %vm224_vm3 = vcmp.eq.s32.totalorder %v633_v22, %v223_v41 }
 0x3a7   :  { %v418_v43 = vsel %vm224_vm3, 1.0, %v540_v6 }
 0x3e5   :  { %v307_v42 = vpop.permute.xlu1 %306 }
 0x3e6   :  { %v317_v44 = vsel %vm201_vm6, %v418_v43, %v307_v42 }
 0x3e9   :  { %v315_v46 = vpop.permute.xlu1 %314 }
 0x3ec   :  { %v311_v45 = vpop.permute.xlu0 %310 }
 0x3ed   :  { %v319_v47 = vsel %vm318_vm4, %v317_v44, %v311_v45 }
 0x3ee   :  { %v321_v48 = vsel %vm320_vm5, %v319_v47, %v315_v46 }
 0x3ef   :  { %481 = vmatmul.mubr.msk.f32.vlgmr.msra.gmra.mrb[2].mxu0 %vm36_vm1, %v321_v48 }
 0x4c2   :  { %v395_v49 = vpop.f32.mrb[2].mxu0 }
 0x4c3   :  { %399 = vst.msk [vmem:[#allocation2] sm:$0xff] %vm36_vm1, %v395_v49  ;;  %v482_v50 = vpop.f32.mrb[3].mxu0 }
 0x4c4   :  { %525 = shalt.err (!%p522_p4)
}
 0x4c5   :  { %s526_s12 = scalar_lea.hbm %s701_s6, 128 }
 0x4c6   :  { %p527_p5 = scmp.ne.s32.totalorder %s701_s6, %s526_s12  ;;  %p530_p6 = scmp.lt.u32.totalorder %s526_s12, %s701_s6 }
 0x4c8   :  { %p532_p7 = pnand %p530_p6, %p527_p5 }
 0x4ca   :  { %535 = shalt.err (!%p532_p7)
}
 0x4cb   :  { %409 = dma.vmem_to_hbm [thread:$0]  %s407_s9, 128, %s701_s6, [#allocation3]  }
 0x4cc   :  { %536 = dma.done.wait [#allocation3], 128  }
 0x4cd   :  { %537 = vsyncadd [#allocation3], 4294967168 }
 0x4ce   :  { %413 = vsyncpa [#allocation3], 1 }

</bundles_post_ra>
